<compile_context>
chip_gen: v7x
topology: tpu7x:2x2x1
jax: 0.10.0
libtpu: 0.0.40
codegen_flags: <defaults>
</compile_context>

<pallas_src>
import functools

import jax
import jax.numpy as jnp
from jax import lax
from jax.experimental import pallas as pl
from jax.experimental.pallas import tpu as pltpu


def _round_up(x, m):
    return -(-x // m) * m


def _contrastive_loss_kernel(v_ref, l_ref, out_ref,
                             vn_s_ref, ln_s_ref, acc_ref, *,
                             n_valid: int, block_rows: int,
                             inv_temp: float, symmetric: bool,
                             mxu_bf16: bool):
    i = pl.program_id(0)
    nb = pl.num_programs(0)
    TB = block_rows
    B_pad = vn_s_ref.shape[0]
    padded = (B_pad != n_valid)          # static python bool
    eps = 1e-12

    @pl.when(i == 0)
    def _init():
        v = v_ref[...].astype(jnp.float32)
        l = l_ref[...].astype(jnp.float32)
        # F.normalize(p=2, eps=1e-12): x * rsqrt(max(sum(x^2), eps^2))
        v_inv = lax.rsqrt(jnp.maximum(jnp.sum(v * v, axis=-1, keepdims=True),
                                      eps * eps))
        l_inv = lax.rsqrt(jnp.maximum(jnp.sum(l * l, axis=-1, keepdims=True),
                                      eps * eps))
        # Fold 1/temperature into the vision side: logits come out of the MXU
        # already scaled.
        vn_s_ref[...] = v * (v_inv * inv_temp)
        ln_s_ref[...] = l * l_inv
        acc_ref[0] = jnp.float32(0.0)   # sum of row-LSE, vision -> language
        acc_ref[1] = jnp.float32(0.0)   # sum of row-LSE, language -> vision
        acc_ref[2] = jnp.float32(0.0)   # sum of diagonal logits (shared)

    row0 = pl.multiple_of(i * TB, TB)
    v_blk = vn_s_ref[pl.ds(row0, TB), :]   # (TB, D), already * 1/temp
    l_blk = ln_s_ref[pl.ds(row0, TB), :]   # (TB, D)

    if padded:
        col_mask = lax.broadcasted_iota(jnp.int32, (TB, B_pad), 1) < n_valid
        row_mask = (lax.broadcasted_iota(jnp.int32, (TB, 1), 0) + row0) < n_valid

    mxu_dt = jnp.bfloat16 if mxu_bf16 else jnp.float32
    dn = (((1,), (1,)), ((), ()))          # contract embedding dim of both sides

    def row_lse_sum(a_blk, b_full):
        logits = lax.dot_general(a_blk.astype(mxu_dt), b_full.astype(mxu_dt),
                                 dimension_numbers=dn,
                                 preferred_element_type=jnp.float32)  # (TB, B_pad)
        if padded:
            logits = jnp.where(col_mask, logits, jnp.float32(-1e30))
        m = jnp.max(logits, axis=-1, keepdims=True)
        lse = m + jnp.log(jnp.sum(jnp.exp(logits - m), axis=-1, keepdims=True))
        if padded:
            lse = jnp.where(row_mask, lse, jnp.float32(0.0))
        return jnp.sum(lse)

    # vision -> language: rows of the (scaled) similarity matrix.
    acc_ref[0] = acc_ref[0] + row_lse_sum(v_blk, ln_s_ref[...])
    # Shared diagonal term: sum_i (vn_i / temp) . ln_i  (padded rows are zero).
    acc_ref[2] = acc_ref[2] + jnp.sum(v_blk * l_blk)

    if symmetric:
        # language -> vision: rows of the transposed logits via a second
        # matmul, reusing the lane-direction LSE path (no axis=0 reductions).
        acc_ref[1] = acc_ref[1] + row_lse_sum(l_blk, vn_s_ref[...])

    @pl.when(i == nb - 1)
    def _finalize():
        inv_b = jnp.float32(1.0 / n_valid)
        loss_v2l = (acc_ref[0] - acc_ref[2]) * inv_b
        if symmetric:
            loss_l2v = (acc_ref[1] - acc_ref[2]) * inv_b
            out_ref[0, 0] = 0.5 * (loss_v2l + loss_l2v)
        else:
            out_ref[0, 0] = loss_v2l


def contrastive_alignment_loss(vision_embeddings,
                               language_embeddings,
                               temperature: float = 0.07,
                               symmetric: bool = True,
                               block_rows=None,
                               mxu_bf16: bool = False):
    """JAX/Pallas equivalent of ContrastiveAlignmentLoss.forward."""
    assert vision_embeddings.ndim == 2 and language_embeddings.ndim == 2
    assert vision_embeddings.shape == language_embeddings.shape
    B, D = vision_embeddings.shape
    if B <= 1:
        # Matches the PyTorch module's degenerate-batch behavior.
        return jnp.float32(0.0)

    # Row-block size: single block for moderate batches, balanced blocks
    # (<=256 rows, MXU aligned) otherwise; always a multiple of 8 (sublane).
    if block_rows is None:
        n_blk = -(-B // 256)
        block_rows = -(-B // n_blk)
    TB = _round_up(max(int(block_rows), 1), 8)
    n_blocks = -(-B // TB)
    B_pad = TB * n_blocks
    # Lane-dense embedding dim (zero pad: norms and dot products unchanged).
    D_pad = _round_up(D, 128)

    v = vision_embeddings
    l = language_embeddings
    if B_pad != B or D_pad != D:
        v = jnp.pad(v, ((0, B_pad - B), (0, D_pad - D)))
        l = jnp.pad(l, ((0, B_pad - B), (0, D_pad - D)))

    inv_temp = 1.0 / max(float(temperature), 1e-6)

    kernel = functools.partial(
        _contrastive_loss_kernel,
        n_valid=B, block_rows=TB, inv_temp=inv_temp,
        symmetric=symmetric, mxu_bf16=mxu_bf16)

    # Explicit scoped-VMEM budget: resident inputs (double-buffer headroom) +
    # normalized scratch + a few (TB, B_pad) logits-sized temporaries.
    in_bytes = 2 * B_pad * D_pad * v.dtype.itemsize
    scratch_bytes = 2 * B_pad * D_pad * 4
    tile_bytes = 8 * TB * B_pad * 4
    vmem_limit = int(min(64 * 1024 * 1024,
                         max(16 * 1024 * 1024,
                             2 * in_bytes + scratch_bytes + tile_bytes
                             + (1 << 20))))

    out = pl.pallas_call(
        kernel,
        out_shape=jax.ShapeDtypeStruct((1, 1), jnp.float32),
        grid_spec=pltpu.PrefetchScalarGridSpec(
            num_scalar_prefetch=0,
            grid=(n_blocks,),
            in_specs=[
                pl.BlockSpec((B_pad, D_pad), lambda i: (0, 0)),  # vision (resident)
                pl.BlockSpec((B_pad, D_pad), lambda i: (0, 0)),  # language (resident)
            ],
            out_specs=pl.BlockSpec((1, 1), lambda i: (0, 0),
                                   memory_space=pltpu.SMEM),
            scratch_shapes=[
                pltpu.VMEM((B_pad, D_pad), jnp.float32),   # vn * (1/temp)
                pltpu.VMEM((B_pad, D_pad), jnp.float32),   # ln
                pltpu.SMEM((3,), jnp.float32),             # partial sums
            ],
        ),
        compiler_params=pltpu.CompilerParams(
            # Grid axis is a reduction (shared scalar accumulators).
            dimension_semantics=("arbitrary",),
            vmem_limit_bytes=vmem_limit),
    )(v, l)
    return out[0, 0]


def _reference_loss(v, l, temperature=0.07, symmetric=True):
    """Pure-JAX reference for correctness check."""
    v = v.astype(jnp.float32)
    l = l.astype(jnp.float32)
    vn = v / jnp.maximum(jnp.linalg.norm(v, axis=-1, keepdims=True), 1e-12)
    ln = l / jnp.maximum(jnp.linalg.norm(l, axis=-1, keepdims=True), 1e-12)
    logits = (vn @ ln.T) / jnp.maximum(temperature, 1e-6)
    labels = jnp.arange(v.shape[0])

    def ce(lg):
        lse = jax.scipy.special.logsumexp(lg, axis=-1)
        return jnp.mean(lse - lg[jnp.arange(lg.shape[0]), labels])

    loss = ce(logits)
    if symmetric:
        loss = 0.5 * (loss + ce(logits.T))
    return loss


if __name__ == "__main__":
    key = jax.random.PRNGKey(0)
    k1, k2, k3, k4 = jax.random.split(key, 4)

    # Case 1: single block, symmetric (D padded 32 -> 128 internally).
    v1 = jax.random.normal(k1, (8, 32), dtype=jnp.float32)
    l1 = jax.random.normal(k2, (8, 32), dtype=jnp.float32)
    out1 = jax.block_until_ready(
        contrastive_alignment_loss(v1, l1, temperature=0.07, symmetric=True))
    ref1 = _reference_loss(v1, l1, temperature=0.07, symmetric=True)
    assert jnp.allclose(out1, ref1, atol=1e-4, rtol=1e-4), (out1, ref1)

    # Case 2: asymmetric (vision -> language only).
    out2 = jax.block_until_ready(
        contrastive_alignment_loss(v1, l1, temperature=0.07, symmetric=False))
    ref2 = _reference_loss(v1, l1, temperature=0.07, symmetric=False)
    assert jnp.allclose(out2, ref2, atol=1e-4, rtol=1e-4), (out2, ref2)

    # Case 3: multi-block grid (3 row blocks) with row + dim padding/masking.
    v3 = jax.random.normal(k3, (20, 48), dtype=jnp.float32)
    l3 = jax.random.normal(k4, (20, 48), dtype=jnp.float32)
    out3 = jax.block_until_ready(
        contrastive_alignment_loss(v3, l3, temperature=0.1, symmetric=True,
                                   block_rows=8))
    ref3 = _reference_loss(v3, l3, temperature=0.1, symmetric=True)
    assert jnp.allclose(out3, ref3, atol=1e-4, rtol=1e-4), (out3, ref3)

    print("KERNEL_OK")
</pallas_src>

<mosaic_0001>
module attributes {stable_mosaic.version = 11 : i64} {
  func.func @_contrastive_loss_kernel(%arg0: i32, %arg1: memref<8x128xf32, #tpu.memory_space<vmem>>, %arg2: memref<8x128xf32, #tpu.memory_space<vmem>>, %arg3: memref<1x1xf32, #tpu.memory_space<smem>>, %arg4: memref<8x128xf32, #tpu.memory_space<vmem>>, %arg5: memref<8x128xf32, #tpu.memory_space<vmem>>, %arg6: memref<3xf32, #tpu.memory_space<smem>>) attributes {dimension_semantics = [#tpu.dimension_semantics<arbitrary>], iteration_bounds = array<i64: 1>, scalar_prefetch = 0 : i64, scratch_operands = 3 : i64, tpu.core_type = #tpu.core_type<tc>, window_params = [{pipeline_mode = #tpu.pipeline_mode<synchronous>, transform_indices = @transform_0, window_bounds = array<i64: 8, 128>}, {pipeline_mode = #tpu.pipeline_mode<synchronous>, transform_indices = @transform_1, window_bounds = array<i64: 8, 128>}, {transform_indices = @transform_2, window_bounds = array<i64: 1, 1>}]} {
    %c0_i32 = arith.constant 0 : i32
    %0 = arith.cmpi eq, %arg0, %c0_i32 : i32
    %1 = arith.extui %0 : i1 to i32
    %c0_i32_0 = arith.constant 0 : i32
    %2 = arith.cmpi ne, %1, %c0_i32_0 : i32
    scf.if %2 {
      %c0_20 = arith.constant 0 : index
      %c0_21 = arith.constant 0 : index
      %56 = vector.load %arg1[%c0_20, %c0_21] : memref<8x128xf32, #tpu.memory_space<vmem>>, vector<8x128xf32>
      %c0_22 = arith.constant 0 : index
      %c0_23 = arith.constant 0 : index
      %57 = vector.load %arg2[%c0_22, %c0_23] : memref<8x128xf32, #tpu.memory_space<vmem>>, vector<8x128xf32>
      %58 = arith.mulf %56, %56 : vector<8x128xf32>
      %cst_24 = arith.constant dense<0.000000e+00> : vector<8xf32>
      %59 = vector.multi_reduction <add>, %58, %cst_24 [1] : vector<8x128xf32> to vector<8xf32>
      %60 = vector.shape_cast %59 : vector<8xf32> to vector<8x1xf32>
      %cst_25 = arith.constant 1.000000e-24 : f32
      %61 = vector.broadcast %cst_25 : f32 to vector<8x1xf32>
      %62 = arith.maximumf %60, %61 : vector<8x1xf32>
      %63 = math.rsqrt %62 : vector<8x1xf32>
      %64 = arith.mulf %57, %57 : vector<8x128xf32>
      %cst_26 = arith.constant dense<0.000000e+00> : vector<8xf32>
      %65 = vector.multi_reduction <add>, %64, %cst_26 [1] : vector<8x128xf32> to vector<8xf32>
      %66 = vector.shape_cast %65 : vector<8xf32> to vector<8x1xf32>
      %cst_27 = arith.constant 1.000000e-24 : f32
      %67 = vector.broadcast %cst_27 : f32 to vector<8x1xf32>
      %68 = arith.maximumf %66, %67 : vector<8x1xf32>
      %69 = math.rsqrt %68 : vector<8x1xf32>
      %cst_28 = arith.constant 14.2857141 : f32
      %70 = vector.broadcast %cst_28 : f32 to vector<8x1xf32>
      %71 = arith.mulf %63, %70 : vector<8x1xf32>
      %72 = vector.broadcast %71 : vector<8x1xf32> to vector<8x128xf32>
      %73 = arith.mulf %56, %72 : vector<8x128xf32>
      %c0_29 = arith.constant 0 : index
      %c0_30 = arith.constant 0 : index
      %74 = vector.load %arg4[%c0_29, %c0_30] : memref<8x128xf32, #tpu.memory_space<vmem>>, vector<8x128xf32>
      tpu.vector_store %arg4[%c0_29, %c0_30], %73 {strides = array<i32>} : memref<8x128xf32, #tpu.memory_space<vmem>>, vector<8x128xf32>,
      %75 = vector.broadcast %69 : vector<8x1xf32> to vector<8x128xf32>
      %76 = arith.mulf %57, %75 : vector<8x128xf32>
      %c0_31 = arith.constant 0 : index
      %c0_32 = arith.constant 0 : index
      %77 = vector.load %arg5[%c0_31, %c0_32] : memref<8x128xf32, #tpu.memory_space<vmem>>, vector<8x128xf32>
      tpu.vector_store %arg5[%c0_31, %c0_32], %76 {strides = array<i32>} : memref<8x128xf32, #tpu.memory_space<vmem>>, vector<8x128xf32>,
      %cst_33 = arith.constant 0.000000e+00 : f32
      %c0_34 = arith.constant 0 : index
      %78 = memref.load %arg6[%c0_34] : memref<3xf32, #tpu.memory_space<smem>>
      memref.store %cst_33, %arg6[%c0_34] : memref<3xf32, #tpu.memory_space<smem>>
      %cst_35 = arith.constant 0.000000e+00 : f32
      %c1_36 = arith.constant 1 : index
      %79 = memref.load %arg6[%c1_36] : memref<3xf32, #tpu.memory_space<smem>>
      memref.store %cst_35, %arg6[%c1_36] : memref<3xf32, #tpu.memory_space<smem>>
      %cst_37 = arith.constant 0.000000e+00 : f32
      %c2_38 = arith.constant 2 : index
      %80 = memref.load %arg6[%c2_38] : memref<3xf32, #tpu.memory_space<smem>>
      memref.store %cst_37, %arg6[%c2_38] : memref<3xf32, #tpu.memory_space<smem>>
    } else {
    }
    %c8_i32 = arith.constant 8 : i32
    %3 = arith.muli %arg0, %c8_i32 : i32
    %4 = tpu.assume_multiple %3, 8 : i32
    %5 = arith.index_cast %4 : i32 to index
    %c0 = arith.constant 0 : index
    %6 = vector.load %arg4[%5, %c0] : memref<8x128xf32, #tpu.memory_space<vmem>>, vector<8x128xf32>
    %7 = arith.index_cast %4 : i32 to index
    %c0_1 = arith.constant 0 : index
    %8 = vector.load %arg5[%7, %c0_1] : memref<8x128xf32, #tpu.memory_space<vmem>>, vector<8x128xf32>
    %c0_2 = arith.constant 0 : index
    %9 = memref.load %arg6[%c0_2] : memref<3xf32, #tpu.memory_space<smem>>
    %c0_3 = arith.constant 0 : index
    %c0_4 = arith.constant 0 : index
    %10 = vector.load %arg5[%c0_3, %c0_4] : memref<8x128xf32, #tpu.memory_space<vmem>>, vector<8x128xf32>
    %cst = arith.constant dense<0.000000e+00> : vector<8x8xf32>
    %11 = tpu.matmul %6, %10, %cst {dimension_numbers = #tpu.dot_dimension_numbers<[1], [1], [0], [0], [0, 0, 1, 0], [], []>} : vector<8x128xf32>, vector<8x128xf32>, vector<8x8xf32> -> vector<8x8xf32>
    %cst_5 = arith.constant dense<0xFF800000> : vector<8xf32>
    %12 = vector.multi_reduction <maximumf>, %11, %cst_5 [1] : vector<8x8xf32> to vector<8xf32>
    %13 = vector.shape_cast %12 : vector<8xf32> to vector<8x1xf32>
    %14 = vector.broadcast %13 : vector<8x1xf32> to vector<8x8xf32>
    %15 = arith.subf %11, %14 : vector<8x8xf32>
    %16 = math.exp %15 : vector<8x8xf32>
    %cst_6 = arith.constant dense<0.000000e+00> : vector<8xf32>
    %17 = vector.multi_reduction <add>, %16, %cst_6 [1] : vector<8x8xf32> to vector<8xf32>
    %18 = vector.shape_cast %17 : vector<8xf32> to vector<8x1xf32>
    %19 = math.log %18 : vector<8x1xf32>
    %20 = arith.addf %13, %19 : vector<8x1xf32>
    %21 = vector.shape_cast %20 : vector<8x1xf32> to vector<1x8x1xf32>
    %cst_7 = arith.constant dense<0.000000e+00> : vector<1xf32>
    %22 = vector.multi_reduction <add>, %21, %cst_7 [1, 2] : vector<1x8x1xf32> to vector<1xf32>
    %23 = vector.shape_cast %22 : vector<1xf32> to vector<1x1x1xf32>
    %24 = vector.extract %23[0, 0, 0] : f32 from vector<1x1x1xf32>
    %25 = arith.addf %9, %24 : f32
    %c0_8 = arith.constant 0 : index
    %26 = memref.load %arg6[%c0_8] : memref<3xf32, #tpu.memory_space<smem>>
    memref.store %25, %arg6[%c0_8] : memref<3xf32, #tpu.memory_space<smem>>
    %c2 = arith.constant 2 : index
    %27 = memref.load %arg6[%c2] : memref<3xf32, #tpu.memory_space<smem>>
    %28 = arith.mulf %6, %8 : vector<8x128xf32>
    %29 = vector.shape_cast %28 : vector<8x128xf32> to vector<1x8x128xf32>
    %cst_9 = arith.constant dense<0.000000e+00> : vector<1xf32>
    %30 = vector.multi_reduction <add>, %29, %cst_9 [1, 2] : vector<1x8x128xf32> to vector<1xf32>
    %31 = vector.shape_cast %30 : vector<1xf32> to vector<1x1x1xf32>
    %32 = vector.extract %31[0, 0, 0] : f32 from vector<1x1x1xf32>
    %33 = arith.addf %27, %32 : f32
    %c2_10 = arith.constant 2 : index
    %34 = memref.load %arg6[%c2_10] : memref<3xf32, #tpu.memory_space<smem>>
    memref.store %33, %arg6[%c2_10] : memref<3xf32, #tpu.memory_space<smem>>
    %c1 = arith.constant 1 : index
    %35 = memref.load %arg6[%c1] : memref<3xf32, #tpu.memory_space<smem>>
    %c0_11 = arith.constant 0 : index
    %c0_12 = arith.constant 0 : index
    %36 = vector.load %arg4[%c0_11, %c0_12] : memref<8x128xf32, #tpu.memory_space<vmem>>, vector<8x128xf32>
    %cst_13 = arith.constant dense<0.000000e+00> : vector<8x8xf32>
    %37 = tpu.matmul %8, %36, %cst_13 {dimension_numbers = #tpu.dot_dimension_numbers<[1], [1], [0], [0], [0, 0, 1, 0], [], []>} : vector<8x128xf32>, vector<8x128xf32>, vector<8x8xf32> -> vector<8x8xf32>
    %cst_14 = arith.constant dense<0xFF800000> : vector<8xf32>
    %38 = vector.multi_reduction <maximumf>, %37, %cst_14 [1] : vector<8x8xf32> to vector<8xf32>
    %39 = vector.shape_cast %38 : vector<8xf32> to vector<8x1xf32>
    %40 = vector.broadcast %39 : vector<8x1xf32> to vector<8x8xf32>
    %41 = arith.subf %37, %40 : vector<8x8xf32>
    %42 = math.exp %41 : vector<8x8xf32>
    %cst_15 = arith.constant dense<0.000000e+00> : vector<8xf32>
    %43 = vector.multi_reduction <add>, %42, %cst_15 [1] : vector<8x8xf32> to vector<8xf32>
    %44 = vector.shape_cast %43 : vector<8xf32> to vector<8x1xf32>
    %45 = math.log %44 : vector<8x1xf32>
    %46 = arith.addf %39, %45 : vector<8x1xf32>
    %47 = vector.shape_cast %46 : vector<8x1xf32> to vector<1x8x1xf32>
    %cst_16 = arith.constant dense<0.000000e+00> : vector<1xf32>
    %48 = vector.multi_reduction <add>, %47, %cst_16 [1, 2] : vector<1x8x1xf32> to vector<1xf32>
    %49 = vector.shape_cast %48 : vector<1xf32> to vector<1x1x1xf32>
    %50 = vector.extract %49[0, 0, 0] : f32 from vector<1x1x1xf32>
    %51 = arith.addf %35, %50 : f32
    %c1_17 = arith.constant 1 : index
    %52 = memref.load %arg6[%c1_17] : memref<3xf32, #tpu.memory_space<smem>>
    memref.store %51, %arg6[%c1_17] : memref<3xf32, #tpu.memory_space<smem>>
    %c0_i32_18 = arith.constant 0 : i32
    %53 = arith.cmpi eq, %arg0, %c0_i32_18 : i32
    %54 = arith.extui %53 : i1 to i32
    %c0_i32_19 = arith.constant 0 : i32
    %55 = arith.cmpi ne, %54, %c0_i32_19 : i32
    scf.if %55 {
      %c0_20 = arith.constant 0 : index
      %56 = memref.load %arg6[%c0_20] : memref<3xf32, #tpu.memory_space<smem>>
      %c2_21 = arith.constant 2 : index
      %57 = memref.load %arg6[%c2_21] : memref<3xf32, #tpu.memory_space<smem>>
      %58 = arith.subf %56, %57 : f32
      %cst_22 = arith.constant 1.250000e-01 : f32
      %59 = arith.mulf %58, %cst_22 : f32
      %c1_23 = arith.constant 1 : index
      %60 = memref.load %arg6[%c1_23] : memref<3xf32, #tpu.memory_space<smem>>
      %c2_24 = arith.constant 2 : index
      %61 = memref.load %arg6[%c2_24] : memref<3xf32, #tpu.memory_space<smem>>
      %62 = arith.subf %60, %61 : f32
      %cst_25 = arith.constant 1.250000e-01 : f32
      %63 = arith.mulf %62, %cst_25 : f32
      %64 = arith.addf %59, %63 : f32
      %cst_26 = arith.constant 5.000000e-01 : f32
      %65 = arith.mulf %cst_26, %64 : f32
      %c0_27 = arith.constant 0 : index
      %c0_28 = arith.constant 0 : index
      %66 = memref.load %arg3[%c0_27, %c0_28] : memref<1x1xf32, #tpu.memory_space<smem>>
      memref.store %65, %arg3[%c0_27, %c0_28] : memref<1x1xf32, #tpu.memory_space<smem>>
    } else {
    }
    return
  }
  func.func @transform_0(%arg0: i32) -> (i32, i32) {
    %c0_i32 = arith.constant 0 : i32
    %c0_i32_0 = arith.constant 0 : i32
    %c0_i32_1 = arith.constant 0 : i32
    return %c0_i32, %c0_i32_0 : i32, i32
  }
  func.func @transform_1(%arg0: i32) -> (i32, i32) {
    %c0_i32 = arith.constant 0 : i32
    %c0_i32_0 = arith.constant 0 : i32
    %c0_i32_1 = arith.constant 0 : i32
    return %c0_i32, %c0_i32_0 : i32, i32
  }
  func.func @transform_2(%arg0: i32) -> (i32, i32) {
    %c0_i32 = arith.constant 0 : i32
    %c0_i32_0 = arith.constant 0 : i32
    %c0_i32_1 = arith.constant 0 : i32
    return %c0_i32, %c0_i32_0 : i32, i32
  }
}

</mosaic_0001>

<bundles_post_ra>
// kernel: tpu_custom_call.1
= control target key start
LH: loop header
LB: loop body
LE: loop exit
PB: predicated region body
PF: predicated region fallthrough
CT: control target
= control target key end

     0   :  { %7 = vsyncpa [#allocation6], 0  ;;  %s468_s0 = inlined_call_operand.hbm [shape: f32[8,128], index: 0, kind: input, shape index: {}]   ;;  %s469_s1 = inlined_call_operand.hbm [shape: f32[8,128], index: 1, kind: input, shape index: {}]   ;;  %s470_s2 = inlined_call_operand.hbm [shape: f32[1,1], index: 2, kind: output, shape index: {}]  }
   0x1   :  { %8 = vsyncpa [#allocation9], 0 }
   0x2   :  { %9 = vsyncpa [#allocation7], 0  ;;  %s408_s9 = smov [#allocation5]   ;;  %s409_s11 = smov [#allocation8]  }
   0x3   :  { %s16_s10 = sshll.u32 %s408_s9, 4  ;;  %s26_s12 = sshll.u32 %s409_s11, 4  ;;  %s17_s10 = int_to_ptr.vmem [resolvable:$true] %s16_s10  ;;  %s27_s12 = int_to_ptr.vmem [resolvable:$true] %s26_s12 }
   0x4   :  { %s348_s15 = scalar_lea.hbm %s468_s0, 128 }
   0x5   :  { %p349_p0 = scmp.ne.s32.totalorder %s468_s0, %s348_s15  ;;  %p352_p1 = scmp.lt.u32.totalorder %s348_s15, %s468_s0 }
   0x7   :  { %p354_p2 = pnand %p352_p1, %p349_p0 }
   0x9   :  { %357 = shalt.err (!%p354_p2)
}
   0xa   :  { %s358_s20 = scalar_lea.vmem %s17_s10, 128  ;;  %p363_p4 = scmp.lt.s32.totalorder %s17_s10, %s17_s10 }
   0xb   :  { %p359_p3 = scmp.ne.s32.totalorder %s17_s10, %s358_s20  ;;  %p364_p5 = scmp.lt.s32.totalorder %s358_s20, %s358_s20 }
   0xd   :  { %p365_p6 = por %p364_p5, %p363_p4 }
   0xf   :  { %p366_p7 = pnand %p365_p6, %p359_p3 }
  0x11   :  { %369 = shalt.err (!%p366_p7)
}
  0x12   :  { %19 = dma.hbm_to_vmem [thread:$0]  %s468_s0, 128, %s17_s10, [#allocation6]  }
  0x13   :  { %s370_s25 = scalar_lea.hbm %s469_s1, 128 }
  0x14   :  { %p371_p8 = scmp.ne.s32.totalorder %s469_s1, %s370_s25  ;;  %p374_p9 = scmp.lt.u32.totalorder %s370_s25, %s469_s1 }
  0x16   :  { %p376_p10 = pnand %p374_p9, %p371_p8 }
  0x18   :  { %379 = shalt.err (!%p376_p10)
}
  0x19   :  { %s380_s30 = scalar_lea.vmem %s27_s12, 128  ;;  %p385_p12 = scmp.lt.s32.totalorder %s27_s12, %s27_s12 }
  0x1a   :  { %p381_p11 = scmp.ne.s32.totalorder %s27_s12, %s380_s30  ;;  %p386_p13 = scmp.lt.s32.totalorder %s380_s30, %s380_s30 }
  0x1c   :  { %p387_p0 = por %p386_p13, %p385_p12 }
  0x1e   :  { %p388_p1 = pnand %p387_p0, %p381_p11 }
  0x20   :  { %391 = shalt.err (!%p388_p1)
}
  0x21   :  { %29 = dma.hbm_to_vmem [thread:$0]  %s469_s1, 128, %s27_s12, [#allocation9]  }
  0x22   :  { %402 = dma.done.wait [#allocation6], 128  }
  0x23   :  { %403 = vsyncadd [#allocation6], 4294967168 }
  0x24   :  { %404 = dma.done.wait [#allocation9], 128  }
  0x25   :  { %405 = vsyncadd [#allocation9], 4294967168  ;;  %v40_v0 = vld [vmem:[#allocation5] sm:$0xff]  ;;  %v41_v1 = vld [vmem:[#allocation8] sm:$0xff]  ;;  %v410_v4 = vmov 0.0   ;;  %vm411_vm0 = vmmov 0  }
  0x26   :  { %v42_v2 = vmul.f32 %v40_v0, %v40_v0  ;;  %v47_v3 = vmul.f32 %v41_v1, %v41_v1  ;;  %320 = vmatprep.subr.mxu1 %v410_v4  ;;  %315 = vmatprep.subr.mxu0 %v410_v4  ;;  %vm140_vm1 = vcmask 64512   ;;  %vm153_vm2 = vcmask 7168   ;;  %s392_s14 = scalar_lea.hbm %s470_s2, 16 }
  0x27   :  { %322 = vmatprep.mubr.msk.f32.mxu1 %vm411_vm0, %v410_v4  ;;  %317 = vmatprep.mubr.msk.f32.mxu0 %vm411_vm0, %v410_v4  ;;  %p393_p2 = scmp.ne.s32.totalorder %s470_s2, %s392_s14  ;;  %p396_p3 = scmp.lt.u32.totalorder %s392_s14, %s470_s2 }
  0x28   :  { %43 = vadd.xlane.f32.xlu0 %v42_v2 }
  0x29   :  { %p398_p4 = pnand %p396_p3, %p393_p2 }
  0x2c   :  { %48 = vadd.xlane.f32.xlu0 %v47_v3 }
  0xb5   :  { %v44_v5 = vpop.xlane.xlu0 %43 }
  0xb6   :  { %v45_v6 = vmax.f32 %v44_v5, 1e-24 }
  0xb8   :  { %336 = vrsqrt.f32 %v45_v6 }
  0xb9   :  { %v49_v7 = vpop.xlane.xlu0 %48 }
  0xba   :  { %v50_v8 = vmax.f32 %v49_v7, 1e-24 }
  0xbc   :  { %338 = vrsqrt.f32 %v50_v8 }
  0xc2   :  { %v337_v9 = vpop.eup %336 }
  0xc3   :  { %v52_v10 = vmul.f32 14.285714, %v337_v9 }
  0xc5   :  { %v53_v11 = vmul.f32 %v52_v10, %v40_v0 }
  0xc6   :  { %v339_v12 = vpop.eup %338 }
  0xc7   :  { %321 = vmatpush3.xpose.msra.mxu1 %v53_v11  ;;  %v55_v13 = vmul.f32 %v339_v12, %v41_v1 }
  0xc9   :  { %316 = vmatpush3.xpose.msra.mxu0 %v55_v13  ;;  %v168_v14 = vmul.f32 %v55_v13, %v53_v11 }
  0xca   :  { %323 = vmatmul.mubr.f32.vlgmr.msra.gmra.mrb[0].mxu1 %v55_v13 }
  0xcc   :  { %318 = vmatmul.mubr.f32.vlgmr.msra.gmra.mrb[0].mxu0 %v53_v11 }
 0x19d   :  { %v249_v15 = vpop.f32.mrb[0].mxu1 }
 0x19e   :  { %v324_v16 = vpop.f32.mrb[1].mxu1  ;;  %v253_v20 = vsel %vm140_vm1, %v249_v15, -inf }
 0x19f   :  { %v136_v17 = vpop.f32.mrb[0].mxu0 }
 0x1a0   :  { %v319_v18 = vpop.f32.mrb[1].mxu0  ;;  %v141_v19 = vsel %vm140_vm1, %v136_v17, -inf }
 0x1a1   :  { %142 = vmax.xlane.f32.xlu1 %v141_v19 }
 0x1a5   :  { %254 = vmax.xlane.f32.xlu1 %v253_v20 }
 0x22e   :  { %v143_v21 = vpop.xlane.xlu1 %142 }
 0x22f   :  { %v144_v22 = vsub.f32 %v136_v17, %v143_v21 }
 0x231   :  { %v145_v23 = vmul.f32 1.442695, %v144_v22 }
 0x232   :  { %v255_v24 = vpop.xlane.xlu1 %254 }
 0x233   :  { %340 = vpow2.f32 %v145_v23  ;;  %v256_v25 = vsub.f32 %v249_v15, %v255_v24 }
 0x235   :  { %v257_v26 = vmul.f32 1.442695, %v256_v25 }
 0x237   :  { %342 = vpow2.f32 %v257_v26 }
 0x23d   :  { %v341_v27 = vpop.eup %340 }
 0x23e   :  { %v147_v28 = vsel %vm140_vm1, %v341_v27, 0.0 }
 0x23f   :  { %148 = vadd.xlane.f32.xlu0 %v147_v28 }
 0x241   :  { %v343_v29 = vpop.eup %342 }
 0x242   :  { %v259_v30 = vsel %vm140_vm1, %v343_v29, 0.0 }
 0x243   :  { %260 = vadd.xlane.f32.xlu1 %v259_v30 }
 0x247   :  { %169 = vadd.xlane.f32.xlu1 %v168_v14 }
 0x2cc   :  { %v149_v31 = vpop.xlane.xlu0 %148 }
 0x2cd   :  { %344 = vlog2.f32 %v149_v31 }
 0x2d0   :  { %v261_v32 = vpop.xlane.xlu1 %260 }
 0x2d1   :  { %346 = vlog2.f32 %v261_v32 }
 0x2d4   :  { %v170_v41 = vpop.xlane.xlu1 %169 }
 0x2d5   :  { %v171_v42 = vrot.slane %v170_v41, 4 }
 0x2d7   :  { %v345_v33 = vpop.eup %344  ;;  %v172_v43 = vadd.f32 %v171_v42, %v170_v41 }
 0x2d8   :  { %v151_v34 = vmul.f32 0.6931472, %v345_v33 }
 0x2d9   :  { %v173_v44 = vrot.slane %v172_v43, 2 }
 0x2da   :  { %v152_v35 = vadd.f32 %v151_v34, %v143_v21 }
 0x2db   :  { %v347_v36 = vpop.eup %346  ;;  %v174_v48 = vadd.f32 %v173_v44, %v172_v43 }
 0x2dc   :  { %v263_v37 = vmul.f32 0.6931472, %v347_v36  ;;  %v154_v38 = vsel %vm153_vm2, %v152_v35, 0.0 }
 0x2dd   :  { %155 = vadd.xlane.f32.xlu0 %v154_v38  ;;  %v175_v54 = vrot.slane %v174_v48, 1 }
 0x2de   :  { %v264_v39 = vadd.f32 %v263_v37, %v255_v24 }
 0x2df   :  { %v176_v59 = vadd.f32 %v175_v54, %v174_v48 }
 0x2e0   :  { %v265_v40 = vsel %vm153_vm2, %v264_v39, 0.0 }
 0x2e1   :  { %266 = vadd.xlane.f32.xlu0 %v265_v40 }
 0x36a   :  { %v156_v45 = vpop.xlane.xlu0 %155 }
 0x36b   :  { %v157_v46 = vrot.slane %v156_v45, 4 }
 0x36d   :  { %v158_v47 = vadd.f32 %v157_v46, %v156_v45 }
 0x36e   :  { %v267_v49 = vpop.xlane.xlu0 %266 }
 0x36f   :  { %v159_v50 = vrot.slane %v158_v47, 2  ;;  %v268_v51 = vrot.slane %v267_v49, 4 }
 0x371   :  { %v269_v52 = vadd.f32 %v268_v51, %v267_v49  ;;  %v160_v53 = vadd.f32 %v159_v50, %v158_v47 }
 0x373   :  { %v270_v55 = vrot.slane %v269_v52, 2  ;;  %v161_v56 = vrot.slane %v160_v53, 1 }
 0x375   :  { %v271_v57 = vadd.f32 %v270_v55, %v269_v52  ;;  %v162_v58 = vadd.f32 %v161_v56, %v160_v53 }
 0x377   :  { %325 = vpush %v162_v58  ;;  %v272_v60 = vrot.slane %v271_v57, 1 }
 0x378   :  { %327 = vpush %v176_v59 }
 0x379   :  { %v273_v61 = vadd.f32 %v272_v60, %v271_v57 }
 0x37b   :  { %329 = vpush %v273_v61 }
 0x3a8   :  { %s326_s1 = spop %325 }
 0x3a9   :  { %s328_s4 = spop %327 }
 0x3aa   :  { %s283_s5 = ssub.f32 %s326_s1, %s328_s4 }
 0x3ac   :  { %s330_s6 = spop %329  ;;  %s284_s8 = smul.f32 0.125, %s283_s5 }
 0x3ad   :  { %s286_s7 = ssub.f32 %s330_s6, %s328_s4 }
 0x3af   :  { %s287_s9 = smul.f32 0.125, %s286_s7 }
 0x3b1   :  { %s288_s10 = sadd.f32 %s287_s9, %s284_s8 }
 0x3b3   :  { %s289_s11 = smul.f32 0.5, %s288_s10 }
 0x3b5   :  { %291 = sst [smem:[#allocation10]] %s289_s11 }
 0x3b6   :  { %401 = shalt.err (!%p398_p4)
}
 0x3b7   :  { %s412_s19 = smov [#allocation10]  }
 0x3b8   :  { %299 = dma.smem_to_hbm %s412_s19, 16, %s470_s2, [#allocation7]  }
 0x3b9   :  { %406 = dma.done.wait [#allocation7], 16  }
 0x3ba   :  { %407 = vsyncadd [#allocation7], 4294967280 }
 0x3bb   :  { %303 = sfence }
 0x3bc   :  { %304 = vsyncpa [#allocation6], 1 }
 0x3bd   :  { %305 = vsyncpa [#allocation9], 1 }
 0x3be   :  { %306 = vsyncpa [#allocation7], 1 }

</bundles_post_ra>
